<compile_context>
chip_gen: v5e
topology: v5e:2x2
jax: 0.10.0
libtpu: 0.0.40
codegen_flags: <defaults>
</compile_context>

<pallas_src>
import math
import functools

import jax
import jax.numpy as jnp
from jax import lax
from jax.experimental import pallas as pl
from jax.experimental.pallas import tpu as pltpu

_NEG_TWO_OVER_E = -2.0 / math.e
_LANE = 128
_SUB = 8
# ~2.5 MiB of (lane-padded) f32 working set per block-sized temporary keeps
# double-buffered inputs + a few f32 temporaries well under a 32 MiB scoped
# VMEM limit on every generation (incl. v7x's 64 MiB physical VMEM per TC).
_BLOCK_F32_BYTES = 2_621_440


def _lambertw_real(y, iters=3):
    """Principal-branch Lambert W for real y >= -1/e (f32 Halley iterations)."""
    e = jnp.float32(math.e)
    # Branch-point series init near y = -1/e, log1p init elsewhere.
    p = jnp.sqrt(jnp.maximum(2.0 * (e * y + 1.0), 0.0))
    w_series = -1.0 + p * (1.0 + p * (-1.0 / 3.0 + p * (11.0 / 72.0)))
    w = jnp.where(y < -0.2, w_series, jnp.log1p(y))

    for it in range(iters):
        ew = jnp.exp(w)
        f = w * ew - y
        wp1 = w + 1.0
        num = 2.0 * f * wp1
        den = 2.0 * ew * wp1 * wp1 - (wp1 + 1.0) * f
        # Sign-preserving 0/0 guard (exact at the branch point w == -1, f == 0).
        tiny = jnp.float32(1e-30)
        den = jnp.where(jnp.abs(den) < tiny, jnp.where(den < 0, -tiny, tiny), den)
        if it + 1 < iters:
            # EUP approx reciprocal: free slot, cleaned up by the final exact step.
            w = w - num * pl.reciprocal(den, approx=True)
        else:
            w = w - num / den
    return w


def _superloss_kernel(logits_ref, targets_ref, loss_ref, sigma_ref, *,
                      tau, lam, inv_lam):
    # logits block: (tb, NC) native dtype -- batch on sublanes, classes on lanes.
    x = logits_ref[...].astype(jnp.float32)
    t = targets_ref[...]                                    # (tb, 1) int32
    tb = x.shape[0]

    # Per-sample cross entropy (reduction='none'): logsumexp - target logit.
    cls = lax.broadcasted_iota(jnp.int32, x.shape, 1)       # class index / lane
    m = jnp.max(x, axis=1, keepdims=True)                   # (tb, 1)
    se = jnp.sum(jnp.exp(x - m), axis=1, keepdims=True)     # (tb, 1)
    tgt_logit = jnp.sum(jnp.where(cls == t, x, 0.0), axis=1, keepdims=True)
    l_col = m + jnp.log(se) - tgt_logit                     # (tb, 1)

    # Repack the per-sample column to full vreg occupancy (8 sublanes x tb//8
    # lanes) for the Halley loop and for lane-dense output stores.
    d = jnp.reshape(l_col, (_SUB, tb // _SUB)) - jnp.float32(tau)
    y = 0.5 * jnp.maximum(jnp.float32(_NEG_TWO_OVER_E), d * jnp.float32(inv_lam))
    w = _lambertw_real(y)
    sigma = jnp.exp(-w)
    # log(sigma) == -w exactly, so lam * log(sigma)**2 == lam * w * w.
    loss = d * sigma + jnp.float32(lam) * (w * w)

    loss_ref[...] = loss
    sigma_ref[...] = sigma


def superloss(logits, targets, *, C=10, lam=1.0):
    """Pallas SuperLoss.  logits: (B, num_classes), targets: (B,) int."""
    B, NC = logits.shape
    tau = float(C)
    lam_f = float(lam)
    inv_lam = 1.0 / lam_f

    # A (tb, NC) block really occupies round_up(NC, 128) lanes in VMEM.
    nc_pad = _LANE * pl.cdiv(NC, _LANE)
    tb = _BLOCK_F32_BYTES // (4 * nc_pad)
    if tb >= 1024:
        tb = (tb // 1024) * 1024        # keep tb//8 a multiple of 128 lanes
    else:
        tb = max(_SUB, (tb // _SUB) * _SUB)
    # TODO(synk): for very large class counts (NC >~ 100k) the class axis should
    # also be tiled (running-max logsumexp in scratch); not needed for typical
    # classification sizes.

    # v7x megacore: guarantee >= 2 grid blocks whenever the batch is non-trivial
    # so dimension_semantics=("parallel",) can split it across both TensorCores.
    if B >= 256:
        half = max(_LANE, ((B + 1) // 2 // _LANE) * _LANE)
        tb = min(tb, half)
    if B <= tb:
        tb = _SUB * pl.cdiv(B, _SUB)    # single small block

    n_blk = pl.cdiv(B, tb)
    b_pad = n_blk * tb

    lg = logits                          # native dtype: cast to f32 inside kernel
    tg = targets.astype(jnp.int32)
    pad_b = b_pad - B
    if pad_b:
        # TODO(synk): a ragged final block (Pallas OOB masking) would avoid this
        # one extra HBM copy when B is not a multiple of the block size.
        lg = jnp.pad(lg, ((0, pad_b), (0, 0)))
        tg = jnp.pad(tg, (0, pad_b))
    tg = tg.reshape(b_pad, 1)

    kernel = functools.partial(_superloss_kernel, tau=tau, lam=lam_f,
                               inv_lam=inv_lam)
    out_cols = tb // _SUB

    loss2d, sigma2d = pl.pallas_call(
        kernel,
        out_shape=(
            jax.ShapeDtypeStruct((n_blk * _SUB, out_cols), jnp.float32),
            jax.ShapeDtypeStruct((n_blk * _SUB, out_cols), jnp.float32),
        ),
        grid=(n_blk,),
        in_specs=[
            pl.BlockSpec((tb, NC), lambda i: (i, 0)),
            pl.BlockSpec((tb, 1), lambda i: (i, 0)),
        ],
        out_specs=(
            pl.BlockSpec((_SUB, out_cols), lambda i: (i, 0)),
            pl.BlockSpec((_SUB, out_cols), lambda i: (i, 0)),
        ),
        compiler_params=pltpu.CompilerParams(
            dimension_semantics=("parallel",),
            vmem_limit_bytes=32 * 1024 * 1024,
        ),
    )(lg, tg)

    # Row-major flatten recovers the original sample order (free reshape).
    loss = loss2d.reshape(b_pad)[:B]
    sigma = sigma2d.reshape(b_pad)[:B]
    return loss, sigma


if __name__ == "__main__":
    import numpy as np

    def _lambertw_np(y):
        """Float64 reference Lambert W (principal branch, y >= -1/e)."""
        y = np.asarray(y, dtype=np.float64)
        p = np.sqrt(np.maximum(2.0 * (np.e * y + 1.0), 0.0))
        w = np.where(y < -0.2,
                     -1.0 + p * (1.0 + p * (-1.0 / 3.0 + p * (11.0 / 72.0))),
                     np.log1p(np.maximum(y, -0.3678794)))
        for _ in range(100):
            ew = np.exp(w)
            f = w * ew - y
            wp1 = w + 1.0
            den = ew * wp1 - (wp1 + 1.0) * f / (2.0 * np.maximum(wp1, 1e-12))
            den = np.where(np.abs(den) < 1e-300, 1e-300, den)
            w = w - f / den
        return w

    def _ref_superloss(logits, targets, tau, lam):
        lg = np.asarray(logits, dtype=np.float64)
        tg = np.asarray(targets)
        m = lg.max(axis=1, keepdims=True)
        lse = m[:, 0] + np.log(np.exp(lg - m).sum(axis=1))
        l_i = lse - lg[np.arange(lg.shape[0]), tg]
        y = 0.5 * np.maximum(-2.0 / np.e, (l_i - tau) / lam)
        w = _lambertw_np(y)
        s = np.exp(-w)
        return (l_i - tau) * s + lam * np.log(s) ** 2, s

    key = jax.random.PRNGKey(0)
    k1, k2 = jax.random.split(key)

    B, NUM_CLASSES = 8, 10        # small shapes; module defaults tau=C=10, lam=1
    logits = jax.random.normal(k1, (B, NUM_CLASSES), dtype=jnp.float32)
    targets = jax.random.randint(k2, (B,), 0, NUM_CLASSES, dtype=jnp.int32)

    loss, sigma = superloss(logits, targets, C=10, lam=1.0)
    jax.block_until_ready((loss, sigma))
    assert loss.shape == (B,) and sigma.shape == (B,)
    assert bool(jnp.all(jnp.isfinite(loss))) and bool(jnp.all(jnp.isfinite(sigma)))

    def _check(C, lam):
        lo, si = superloss(logits, targets, C=C, lam=lam)
        jax.block_until_ready((lo, si))
        lo_r, si_r = _ref_superloss(logits, targets, float(C), float(lam))
        assert np.allclose(np.asarray(si), si_r, rtol=2e-3, atol=2e-3), (C, lam)
        assert np.allclose(np.asarray(lo), lo_r, rtol=2e-3, atol=2e-3), (C, lam)

    _check(10, 1.0)    # module defaults: y clamps at the -1/e branch point
    _check(2.0, 1.0)   # y near / above the branch point, log1p-init branch
    _check(2.8, 0.25)  # wide y range, both init branches + clamp

    print("KERNEL_OK")
</pallas_src>

<mosaic_0001>
module attributes {stable_mosaic.version = 11 : i64} {
  func.func @_superloss_kernel(%arg0: i32, %arg1: memref<8x10xf32, #tpu.memory_space<vmem>>, %arg2: memref<8x1xi32, #tpu.memory_space<vmem>>, %arg3: memref<8x1xf32, #tpu.memory_space<vmem>>, %arg4: memref<8x1xf32, #tpu.memory_space<vmem>>) attributes {dimension_semantics = [#tpu.dimension_semantics<parallel>], iteration_bounds = array<i64: 1>, scalar_prefetch = 0 : i64, scratch_operands = 0 : i64, tpu.core_type = #tpu.core_type<tc>, window_params = [{transform_indices = @transform_0, window_bounds = array<i64: 8, 10>}, {transform_indices = @transform_1, window_bounds = array<i64: 8, 1>}, {transform_indices = @transform_2, window_bounds = array<i64: 8, 1>}, {transform_indices = @transform_3, window_bounds = array<i64: 8, 1>}]} {
    %c0 = arith.constant 0 : index
    %c0_0 = arith.constant 0 : index
    %0 = vector.load %arg1[%c0, %c0_0] : memref<8x10xf32, #tpu.memory_space<vmem>>, vector<8x10xf32>
    %c0_1 = arith.constant 0 : index
    %c0_2 = arith.constant 0 : index
    %1 = vector.load %arg2[%c0_1, %c0_2] : memref<8x1xi32, #tpu.memory_space<vmem>>, vector<8x1xi32>
    %2 = tpu.iota {dimensions = array<i32: 1>} : vector<8x10xi32>
    %cst = arith.constant dense<0xFF800000> : vector<8xf32>
    %3 = vector.multi_reduction <maximumf>, %0, %cst [1] : vector<8x10xf32> to vector<8xf32>
    %4 = vector.shape_cast %3 : vector<8xf32> to vector<8x1xf32>
    %5 = vector.broadcast %4 : vector<8x1xf32> to vector<8x10xf32>
    %6 = arith.subf %0, %5 : vector<8x10xf32>
    %7 = math.exp %6 : vector<8x10xf32>
    %cst_3 = arith.constant dense<0.000000e+00> : vector<8xf32>
    %8 = vector.multi_reduction <add>, %7, %cst_3 [1] : vector<8x10xf32> to vector<8xf32>
    %9 = vector.shape_cast %8 : vector<8xf32> to vector<8x1xf32>
    %10 = vector.broadcast %1 : vector<8x1xi32> to vector<8x10xi32>
    %11 = arith.cmpi eq, %2, %10 : vector<8x10xi32>
    %cst_4 = arith.constant 0.000000e+00 : f32
    %12 = vector.broadcast %cst_4 : f32 to vector<8x10xf32>
    %13 = arith.select %11, %0, %12 : vector<8x10xi1>, vector<8x10xf32>
    %cst_5 = arith.constant dense<0.000000e+00> : vector<8xf32>
    %14 = vector.multi_reduction <add>, %13, %cst_5 [1] : vector<8x10xf32> to vector<8xf32>
    %15 = vector.shape_cast %14 : vector<8xf32> to vector<8x1xf32>
    %16 = math.log %9 : vector<8x1xf32>
    %17 = arith.addf %4, %16 : vector<8x1xf32>
    %18 = arith.subf %17, %15 : vector<8x1xf32>
    %cst_6 = arith.constant 1.000000e+01 : f32
    %19 = vector.broadcast %cst_6 : f32 to vector<8x1xf32>
    %20 = arith.subf %18, %19 : vector<8x1xf32>
    %cst_7 = arith.constant 1.000000e+00 : f32
    %21 = vector.broadcast %cst_7 : f32 to vector<8x1xf32>
    %22 = arith.mulf %20, %21 : vector<8x1xf32>
    %cst_8 = arith.constant -0.735758901 : f32
    %23 = vector.broadcast %cst_8 : f32 to vector<8x1xf32>
    %24 = arith.maximumf %23, %22 : vector<8x1xf32>
    %cst_9 = arith.constant 5.000000e-01 : f32
    %25 = vector.broadcast %cst_9 : f32 to vector<8x1xf32>
    %26 = arith.mulf %25, %24 : vector<8x1xf32>
    %cst_10 = arith.constant 2.71828175 : f32
    %27 = vector.broadcast %cst_10 : f32 to vector<8x1xf32>
    %28 = arith.mulf %27, %26 : vector<8x1xf32>
    %cst_11 = arith.constant 1.000000e+00 : f32
    %29 = vector.broadcast %cst_11 : f32 to vector<8x1xf32>
    %30 = arith.addf %28, %29 : vector<8x1xf32>
    %cst_12 = arith.constant 2.000000e+00 : f32
    %31 = vector.broadcast %cst_12 : f32 to vector<8x1xf32>
    %32 = arith.mulf %31, %30 : vector<8x1xf32>
    %cst_13 = arith.constant 0.000000e+00 : f32
    %33 = vector.broadcast %cst_13 : f32 to vector<8x1xf32>
    %34 = arith.maximumf %32, %33 : vector<8x1xf32>
    %35 = math.sqrt %34 : vector<8x1xf32>
    %cst_14 = arith.constant 0.152777776 : f32
    %36 = vector.broadcast %cst_14 : f32 to vector<8x1xf32>
    %37 = arith.mulf %35, %36 : vector<8x1xf32>
    %cst_15 = arith.constant -0.333333343 : f32
    %38 = vector.broadcast %cst_15 : f32 to vector<8x1xf32>
    %39 = arith.addf %38, %37 : vector<8x1xf32>
    %40 = arith.mulf %35, %39 : vector<8x1xf32>
    %cst_16 = arith.constant 1.000000e+00 : f32
    %41 = vector.broadcast %cst_16 : f32 to vector<8x1xf32>
    %42 = arith.addf %41, %40 : vector<8x1xf32>
    %43 = arith.mulf %35, %42 : vector<8x1xf32>
    %cst_17 = arith.constant -1.000000e+00 : f32
    %44 = vector.broadcast %cst_17 : f32 to vector<8x1xf32>
    %45 = arith.addf %44, %43 : vector<8x1xf32>
    %cst_18 = arith.constant -2.000000e-01 : f32
    %46 = vector.broadcast %cst_18 : f32 to vector<8x1xf32>
    %47 = arith.cmpf olt, %26, %46 : vector<8x1xf32>
    %48 = math.log1p %26 : vector<8x1xf32>
    %49 = arith.select %47, %45, %48 : vector<8x1xi1>, vector<8x1xf32>
    %50 = math.exp %49 : vector<8x1xf32>
    %51 = arith.mulf %49, %50 : vector<8x1xf32>
    %52 = arith.subf %51, %26 : vector<8x1xf32>
    %cst_19 = arith.constant 1.000000e+00 : f32
    %53 = vector.broadcast %cst_19 : f32 to vector<8x1xf32>
    %54 = arith.addf %49, %53 : vector<8x1xf32>
    %cst_20 = arith.constant 2.000000e+00 : f32
    %55 = vector.broadcast %cst_20 : f32 to vector<8x1xf32>
    %56 = arith.mulf %55, %52 : vector<8x1xf32>
    %57 = arith.mulf %56, %54 : vector<8x1xf32>
    %cst_21 = arith.constant 2.000000e+00 : f32
    %58 = vector.broadcast %cst_21 : f32 to vector<8x1xf32>
    %59 = arith.mulf %58, %50 : vector<8x1xf32>
    %60 = arith.mulf %59, %54 : vector<8x1xf32>
    %61 = arith.mulf %60, %54 : vector<8x1xf32>
    %cst_22 = arith.constant 1.000000e+00 : f32
    %62 = vector.broadcast %cst_22 : f32 to vector<8x1xf32>
    %63 = arith.addf %54, %62 : vector<8x1xf32>
    %64 = arith.mulf %63, %52 : vector<8x1xf32>
    %65 = arith.subf %61, %64 : vector<8x1xf32>
    %66 = math.absf %65 : vector<8x1xf32>
    %cst_23 = arith.constant 1.000000e-30 : f32
    %67 = vector.broadcast %cst_23 : f32 to vector<8x1xf32>
    %68 = arith.cmpf olt, %66, %67 : vector<8x1xf32>
    %cst_24 = arith.constant 0.000000e+00 : f32
    %69 = vector.broadcast %cst_24 : f32 to vector<8x1xf32>
    %70 = arith.cmpf olt, %65, %69 : vector<8x1xf32>
    %cst_25 = arith.constant 0.000000e+00 : f32
    %cst_26 = arith.constant 1.000000e-30 : f32
    %71 = arith.subf %cst_25, %cst_26 : f32
    %cst_27 = arith.constant 1.000000e-30 : f32
    %72 = vector.broadcast %71 : f32 to vector<8x1xf32>
    %73 = vector.broadcast %cst_27 : f32 to vector<8x1xf32>
    %74 = arith.select %70, %72, %73 : vector<8x1xi1>, vector<8x1xf32>
    %75 = arith.select %68, %74, %65 : vector<8x1xi1>, vector<8x1xf32>
    %76 = tpu.reciprocal %75 {approx = true} : vector<8x1xf32> -> vector<8x1xf32>
    %77 = arith.mulf %57, %76 : vector<8x1xf32>
    %78 = arith.subf %49, %77 : vector<8x1xf32>
    %79 = math.exp %78 : vector<8x1xf32>
    %80 = arith.mulf %78, %79 : vector<8x1xf32>
    %81 = arith.subf %80, %26 : vector<8x1xf32>
    %cst_28 = arith.constant 1.000000e+00 : f32
    %82 = vector.broadcast %cst_28 : f32 to vector<8x1xf32>
    %83 = arith.addf %78, %82 : vector<8x1xf32>
    %cst_29 = arith.constant 2.000000e+00 : f32
    %84 = vector.broadcast %cst_29 : f32 to vector<8x1xf32>
    %85 = arith.mulf %84, %81 : vector<8x1xf32>
    %86 = arith.mulf %85, %83 : vector<8x1xf32>
    %cst_30 = arith.constant 2.000000e+00 : f32
    %87 = vector.broadcast %cst_30 : f32 to vector<8x1xf32>
    %88 = arith.mulf %87, %79 : vector<8x1xf32>
    %89 = arith.mulf %88, %83 : vector<8x1xf32>
    %90 = arith.mulf %89, %83 : vector<8x1xf32>
    %cst_31 = arith.constant 1.000000e+00 : f32
    %91 = vector.broadcast %cst_31 : f32 to vector<8x1xf32>
    %92 = arith.addf %83, %91 : vector<8x1xf32>
    %93 = arith.mulf %92, %81 : vector<8x1xf32>
    %94 = arith.subf %90, %93 : vector<8x1xf32>
    %95 = math.absf %94 : vector<8x1xf32>
    %cst_32 = arith.constant 1.000000e-30 : f32
    %96 = vector.broadcast %cst_32 : f32 to vector<8x1xf32>
    %97 = arith.cmpf olt, %95, %96 : vector<8x1xf32>
    %cst_33 = arith.constant 0.000000e+00 : f32
    %98 = vector.broadcast %cst_33 : f32 to vector<8x1xf32>
    %99 = arith.cmpf olt, %94, %98 : vector<8x1xf32>
    %cst_34 = arith.constant 0.000000e+00 : f32
    %cst_35 = arith.constant 1.000000e-30 : f32
    %100 = arith.subf %cst_34, %cst_35 : f32
    %cst_36 = arith.constant 1.000000e-30 : f32
    %101 = vector.broadcast %100 : f32 to vector<8x1xf32>
    %102 = vector.broadcast %cst_36 : f32 to vector<8x1xf32>
    %103 = arith.select %99, %101, %102 : vector<8x1xi1>, vector<8x1xf32>
    %104 = arith.select %97, %103, %94 : vector<8x1xi1>, vector<8x1xf32>
    %105 = tpu.reciprocal %104 {approx = true} : vector<8x1xf32> -> vector<8x1xf32>
    %106 = arith.mulf %86, %105 : vector<8x1xf32>
    %107 = arith.subf %78, %106 : vector<8x1xf32>
    %108 = math.exp %107 : vector<8x1xf32>
    %109 = arith.mulf %107, %108 : vector<8x1xf32>
    %110 = arith.subf %109, %26 : vector<8x1xf32>
    %cst_37 = arith.constant 1.000000e+00 : f32
    %111 = vector.broadcast %cst_37 : f32 to vector<8x1xf32>
    %112 = arith.addf %107, %111 : vector<8x1xf32>
    %cst_38 = arith.constant 2.000000e+00 : f32
    %113 = vector.broadcast %cst_38 : f32 to vector<8x1xf32>
    %114 = arith.mulf %113, %110 : vector<8x1xf32>
    %115 = arith.mulf %114, %112 : vector<8x1xf32>
    %cst_39 = arith.constant 2.000000e+00 : f32
    %116 = vector.broadcast %cst_39 : f32 to vector<8x1xf32>
    %117 = arith.mulf %116, %108 : vector<8x1xf32>
    %118 = arith.mulf %117, %112 : vector<8x1xf32>
    %119 = arith.mulf %118, %112 : vector<8x1xf32>
    %cst_40 = arith.constant 1.000000e+00 : f32
    %120 = vector.broadcast %cst_40 : f32 to vector<8x1xf32>
    %121 = arith.addf %112, %120 : vector<8x1xf32>
    %122 = arith.mulf %121, %110 : vector<8x1xf32>
    %123 = arith.subf %119, %122 : vector<8x1xf32>
    %124 = math.absf %123 : vector<8x1xf32>
    %cst_41 = arith.constant 1.000000e-30 : f32
    %125 = vector.broadcast %cst_41 : f32 to vector<8x1xf32>
    %126 = arith.cmpf olt, %124, %125 : vector<8x1xf32>
    %cst_42 = arith.constant 0.000000e+00 : f32
    %127 = vector.broadcast %cst_42 : f32 to vector<8x1xf32>
    %128 = arith.cmpf olt, %123, %127 : vector<8x1xf32>
    %cst_43 = arith.constant 0.000000e+00 : f32
    %cst_44 = arith.constant 1.000000e-30 : f32
    %129 = arith.subf %cst_43, %cst_44 : f32
    %cst_45 = arith.constant 1.000000e-30 : f32
    %130 = vector.broadcast %129 : f32 to vector<8x1xf32>
    %131 = vector.broadcast %cst_45 : f32 to vector<8x1xf32>
    %132 = arith.select %128, %130, %131 : vector<8x1xi1>, vector<8x1xf32>
    %133 = arith.select %126, %132, %123 : vector<8x1xi1>, vector<8x1xf32>
    %134 = arith.divf %115, %133 : vector<8x1xf32>
    %135 = arith.subf %107, %134 : vector<8x1xf32>
    %cst_46 = arith.constant 0.000000e+00 : f32
    %136 = vector.broadcast %cst_46 : f32 to vector<8x1xf32>
    %137 = arith.subf %136, %135 : vector<8x1xf32>
    %138 = math.exp %137 : vector<8x1xf32>
    %139 = arith.mulf %20, %138 : vector<8x1xf32>
    %140 = arith.mulf %135, %135 : vector<8x1xf32>
    %cst_47 = arith.constant 1.000000e+00 : f32
    %141 = vector.broadcast %cst_47 : f32 to vector<8x1xf32>
    %142 = arith.mulf %141, %140 : vector<8x1xf32>
    %143 = arith.addf %139, %142 : vector<8x1xf32>
    %c0_48 = arith.constant 0 : index
    %c0_49 = arith.constant 0 : index
    %144 = vector.load %arg3[%c0_48, %c0_49] : memref<8x1xf32, #tpu.memory_space<vmem>>, vector<8x1xf32>
    tpu.vector_store %arg3[%c0_48, %c0_49], %143 {strides = array<i32>} : memref<8x1xf32, #tpu.memory_space<vmem>>, vector<8x1xf32>,
    %c0_50 = arith.constant 0 : index
    %c0_51 = arith.constant 0 : index
    %145 = vector.load %arg4[%c0_50, %c0_51] : memref<8x1xf32, #tpu.memory_space<vmem>>, vector<8x1xf32>
    tpu.vector_store %arg4[%c0_50, %c0_51], %138 {strides = array<i32>} : memref<8x1xf32, #tpu.memory_space<vmem>>, vector<8x1xf32>,
    return
  }
  func.func @transform_0(%arg0: i32) -> (i32, i32) {
    %c0_i32 = arith.constant 0 : i32
    %c0_i32_0 = arith.constant 0 : i32
    return %arg0, %c0_i32 : i32, i32
  }
  func.func @transform_1(%arg0: i32) -> (i32, i32) {
    %c0_i32 = arith.constant 0 : i32
    %c0_i32_0 = arith.constant 0 : i32
    return %arg0, %c0_i32 : i32, i32
  }
  func.func @transform_2(%arg0: i32) -> (i32, i32) {
    %c0_i32 = arith.constant 0 : i32
    %c0_i32_0 = arith.constant 0 : i32
    return %arg0, %c0_i32 : i32, i32
  }
  func.func @transform_3(%arg0: i32) -> (i32, i32) {
    %c0_i32 = arith.constant 0 : i32
    %c0_i32_0 = arith.constant 0 : i32
    return %arg0, %c0_i32 : i32, i32
  }
}

</mosaic_0001>

<bundles_post_ra>
// kernel: tpu_custom_call.1
= control target key start
LH: loop header
LB: loop body
LE: loop exit
PB: predicated region body
PF: predicated region fallthrough
CT: control target
= control target key end

     0   :  { %vm17_vm0 = vcmask 80896   ;;  %v194_v1 = vmov 0   ;;  %v15_v9 = vlaneseq  ;;  %s246_s0 = inlined_call_operand.vmem [shape: f32[8,10], index: 0, kind: input, shape index: {}]   ;;  %s247_s1 = inlined_call_operand.vmem [shape: s32[8,1], index: 1, kind: input, shape index: {}]   ;;  %s248_s3 = inlined_call_operand.vmem [shape: f32[8,1], index: 3, kind: output, shape index: {1}]   ;;  %s249_s2 = inlined_call_operand.vmem [shape: f32[8,1], index: 2, kind: output, shape index: {0}]  }
   0x1   :  { %v13_v0 = vld [vmem:[%s246_s0] sm:$0xff]  ;;  %171 = vset.pattern.permute.xlu0 %v194_v1 }
   0x2   :  { %v18_v2 = vsel %vm17_vm0, %v13_v0, -inf  ;;  %v14_v3 = vld [vmem:[%s247_s1] sm:$0xff]  ;;  %v16_v10 = vand.u32 127, %v15_v9 }
   0x3   :  { %19 = vmax.xlane.f32.xlu0 %v18_v2 }
  0x17   :  { %28 = vperm.xlu0 %171, %v14_v3  }
  0x76   :  { %v20_v4 = vpop.xlane.xlu0 %19 }
  0x77   :  { %v21_v5 = vsub.f32 %v13_v0, %v20_v4 }
  0x79   :  { %v22_v6 = vmul.f32 1.442695, %v21_v5 }
  0x7b   :  { %172 = vpow2.f32 %v22_v6 }
  0x81   :  { %v173_v7 = vpop.eup %172 }
  0x82   :  { %v24_v8 = vsel %vm17_vm0, %v173_v7, 0.0 }
  0x83   :  { %25 = vadd.xlane.f32.xlu1 %v24_v8 }
  0x89   :  { %v29_v11 = vpop.permute.xlu0 %28 }
  0x8a   :  { %vm30_vm1 = vcmp.eq.s32.totalorder %v16_v10, %v29_v11 }
  0x8b   :  { %v31_v12 = vsel %vm30_vm1, %v13_v0, 0.0  ;;  %v195_v0 = vmov 1e-30  }
  0x8c   :  { %v32_v13 = vsel %vm17_vm0, %v31_v12, 0.0  ;;  %vm157_vm0 = vcmask 7168  }
  0x8d   :  { %33 = vadd.xlane.f32.xlu1 %v32_v13 }
  0xf6   :  { %v26_v14 = vpop.xlane.xlu1 %25 }
  0xf7   :  { %174 = vlog2.f32 %v26_v14 }
  0xfd   :  { %v175_v15 = vpop.eup %174 }
  0xfe   :  { %v36_v16 = vmul.f32 0.6931472, %v175_v15 }
 0x100   :  { %v37_v17 = vadd.f32 %v36_v16, %v20_v4  ;;  %v34_v18 = vpop.xlane.xlu1 %33 }
 0x102   :  { %v38_v19 = vsub.f32 %v37_v17, %v34_v18 }
 0x104   :  { %v225_v20 = vadd.f32 -10.0, %v38_v19 }
 0x106   :  { %v40_v21 = vmax.f32 %v225_v20, -0.7357589 }
 0x108   :  { %v228_v22 = vmul.f32 0.5, %v40_v21 }
 0x10a   :  { %v42_v23 = vmul.f32 2.7182817, %v228_v22  ;;  %v65_v33 = vadd.f32 1.0, %v228_v22  ;;  %v68_v39 = vmul.f32 -0.5, %v228_v22  ;;  %v71_v45 = vand.u32 2147483647, %v228_v22 }
 0x10b   :  { %vm64_vm5 = vcmp.lt.f32.partialorder %v228_v22, -0.2 }
 0x10c   :  { %v43_v24 = vadd.f32 1.0, %v42_v23  ;;  %v69_v43 = vadd.f32 1.0, %v68_v39  ;;  %vm72_vm4 = vcmp.lt.f32.partialorder %v71_v45, 0.0004427343 }
 0x10e   :  { %v44_v25 = vmul.f32 2.0, %v43_v24  ;;  %v70_v48 = vmul.f32 %v69_v43, %v228_v22 }
 0x110   :  { %v45_v26 = vmax.f32 %v44_v25, 0.0 }
 0x112   :  { %176 = vrsqrt.f32 %v45_v26  ;;  %vm53_vm2 = vcmp.eq.f32.partialorder %v45_v26, inf  ;;  %v56_v35 = vand.u32 2147483648, %v45_v26  ;;  %vm55_vm3 = vcmp.eq.f32.partialorder %v45_v26, 0.0 }
 0x113   :  { %178 = vlog2.f32 %v65_v33 }
 0x118   :  { %v177_v27 = vpop.eup %176 }
 0x119   :  { %v47_v28 = vmul.f32 %v177_v27, %v45_v26  ;;  %v179_v41 = vpop.eup %178 }
 0x11a   :  { %v67_v46 = vmul.f32 0.6931472, %v179_v41 }
 0x11b   :  { %v48_v29 = vmul.f32 %v177_v27, %v47_v28 }
 0x11c   :  { %v73_v50 = vsel %vm72_vm4, %v70_v48, %v67_v46 }
 0x11d   :  { %v49_v30 = vmul.f32 0.5, %v48_v29 }
 0x11f   :  { %v50_v31 = vsub.f32 1.5, %v49_v30 }
 0x121   :  { %v51_v32 = vmul.f32 %v177_v27, %v50_v31 }
 0x123   :  { %v52_v34 = vmul.f32 %v51_v32, %v45_v26 }
 0x125   :  { %v54_v36 = vsel %vm53_vm2, %v45_v26, %v52_v34 }
 0x126   :  { %v57_v37 = vsel %vm55_vm3, %v56_v35, %v54_v36 }
 0x127   :  { %v58_v38 = vmul.f32 0.15277778, %v57_v37 }
 0x129   :  { %v59_v40 = vadd.f32 -0.33333334, %v58_v38 }
 0x12b   :  { %v60_v42 = vmul.f32 %v59_v40, %v57_v37 }
 0x12d   :  { %v61_v44 = vadd.f32 1.0, %v60_v42 }
 0x12f   :  { %v62_v47 = vmul.f32 %v61_v44, %v57_v37 }
 0x131   :  { %v63_v49 = vadd.f32 -1.0, %v62_v47 }
 0x133   :  { %v74_v51 = vsel %vm64_vm5, %v63_v49, %v73_v50 }
 0x134   :  { %v75_v52 = vmul.f32 1.442695, %v74_v51  ;;  %v79_v53 = vadd.f32 1.0, %v74_v51 }
 0x136   :  { %180 = vpow2.f32 %v75_v52  ;;  %v85_v59 = vadd.f32 1.0, %v79_v53 }
 0x13c   :  { %v181_v54 = vpop.eup %180 }
 0x13d   :  { %v77_v55 = vmul.f32 %v181_v54, %v74_v51  ;;  %v82_v56 = vmul.f32 2.0, %v181_v54 }
 0x13f   :  { %v78_v57 = vsub.f32 %v77_v55, %v228_v22  ;;  %v83_v58 = vmul.f32 %v82_v56, %v79_v53 }
 0x141   :  { %v84_v60 = vmul.f32 %v83_v58, %v79_v53  ;;  %v86_v61 = vmul.f32 %v85_v59, %v78_v57  ;;  %v80_v3 = vmul.f32 2.0, %v78_v57 }
 0x143   :  { %v87_v62 = vsub.f32 %v84_v60, %v86_v61  ;;  %v81_v4 = vmul.f32 %v80_v3, %v79_v53 }
 0x145   :  { %v88_v63 = vand.u32 2147483647, %v87_v62  ;;  %vm90_vm6 = vcmp.lt.f32.partialorder %v87_v62, 0.0 }
 0x146   :  { %v91_v1 = vsel %vm90_vm6, -1e-30, %v195_v0 }
 0x147   :  { %vm89_vm7 = vcmp.lt.f32.partialorder %v88_v63, 1e-30 }
 0x148   :  { %v92_v2 = vsel %vm89_vm7, %v91_v1, %v87_v62 }
 0x149   :  { %182 = vrcp.f32 %v92_v2 }
 0x14f   :  { %v183_v5 = vpop.eup %182 }
 0x150   :  { %v94_v6 = vmul.f32 %v183_v5, %v81_v4 }
 0x152   :  { %v95_v7 = vsub.f32 %v74_v51, %v94_v6 }
 0x154   :  { %v96_v8 = vmul.f32 1.442695, %v95_v7  ;;  %v100_v9 = vadd.f32 1.0, %v95_v7 }
 0x156   :  { %184 = vpow2.f32 %v96_v8  ;;  %v106_v15 = vadd.f32 1.0, %v100_v9 }
 0x15c   :  { %v185_v10 = vpop.eup %184 }
 0x15d   :  { %v98_v11 = vmul.f32 %v185_v10, %v95_v7  ;;  %v103_v12 = vmul.f32 2.0, %v185_v10 }
 0x15f   :  { %v99_v13 = vsub.f32 %v98_v11, %v228_v22  ;;  %v104_v14 = vmul.f32 %v103_v12, %v100_v9 }
 0x161   :  { %v105_v16 = vmul.f32 %v104_v14, %v100_v9  ;;  %v107_v17 = vmul.f32 %v106_v15, %v99_v13  ;;  %v101_v24 = vmul.f32 2.0, %v99_v13 }
 0x163   :  { %v108_v18 = vsub.f32 %v105_v16, %v107_v17  ;;  %v102_v25 = vmul.f32 %v101_v24, %v100_v9 }
 0x165   :  { %v109_v19 = vand.u32 2147483647, %v108_v18  ;;  %vm111_vm8 = vcmp.lt.f32.partialorder %v108_v18, 0.0 }
 0x166   :  { %v112_v21 = vsel %vm111_vm8, -1e-30, %v195_v0 }
 0x167   :  { %vm110_vm9 = vcmp.lt.f32.partialorder %v109_v19, 1e-30 }
 0x168   :  { %v113_v23 = vsel %vm110_vm9, %v112_v21, %v108_v18 }
 0x169   :  { %186 = vrcp.f32 %v113_v23 }
 0x16f   :  { %v187_v26 = vpop.eup %186 }
 0x170   :  { %v115_v27 = vmul.f32 %v187_v26, %v102_v25 }
 0x172   :  { %v116_v28 = vsub.f32 %v95_v7, %v115_v27 }
 0x174   :  { %v117_v29 = vmul.f32 1.442695, %v116_v28  ;;  %v121_v30 = vadd.f32 1.0, %v116_v28 }
 0x176   :  { %188 = vpow2.f32 %v117_v29  ;;  %v127_v36 = vadd.f32 1.0, %v121_v30 }
 0x17c   :  { %v189_v31 = vpop.eup %188 }
 0x17d   :  { %v119_v32 = vmul.f32 %v189_v31, %v116_v28  ;;  %v124_v33 = vmul.f32 2.0, %v189_v31 }
 0x17f   :  { %v120_v34 = vsub.f32 %v119_v32, %v228_v22  ;;  %v125_v35 = vmul.f32 %v124_v33, %v121_v30 }
 0x181   :  { %v126_v37 = vmul.f32 %v125_v35, %v121_v30  ;;  %v128_v38 = vmul.f32 %v127_v36, %v120_v34  ;;  %v122_v47 = vmul.f32 2.0, %v120_v34 }
 0x183   :  { %v129_v39 = vsub.f32 %v126_v37, %v128_v38  ;;  %v123_v51 = vmul.f32 %v122_v47, %v121_v30 }
 0x185   :  { %v130_v40 = vand.u32 2147483647, %v129_v39  ;;  %vm132_vm10 = vcmp.lt.f32.partialorder %v129_v39, 0.0 }
 0x186   :  { %v133_v41 = vsel %vm132_vm10, -1e-30, %v195_v0 }
 0x187   :  { %vm131_vm11 = vcmp.lt.f32.partialorder %v130_v40, 1e-30 }
 0x188   :  { %v134_v42 = vsel %vm131_vm11, %v133_v41, %v129_v39 }
 0x189   :  { %190 = vrcp.f32 %v134_v42  ;;  %v146_v46 = vand.u32 2147483648, %v134_v42  ;;  %v144_v49 = vand.u32 2147483647, %v134_v42  ;;  %vm140_vm13 = vweird.f32 %v134_v42 }
 0x18b   :  { %v147_v50 = vor.u32 1.1754944e-38, %v146_v46  ;;  %vm145_vm15 = vcmp.eq.f32.partialorder %v144_v49, 8.507059e+37 }
 0x18f   :  { %v191_v43 = vpop.eup %190 }
 0x190   :  { %v136_v44 = vmul.f32 %v191_v43, %v134_v42  ;;  %vm141_vm12 = vweird.f32 %v191_v43 }
 0x191   :  { %vm142_vm14 = vmor %vm140_vm13, %vm141_vm12 }
 0x192   :  { %v137_v45 = vsub.f32 1.0, %v136_v44 }
 0x194   :  { %v138_v48 = vmul.f32 %v191_v43, %v137_v45 }
 0x196   :  { %v139_v22 = vadd.f32 %v191_v43, %v138_v48 }
 0x198   :  { %v143_v52 = vsel %vm142_vm14, %v191_v43, %v139_v22 }
 0x199   :  { %v148_v53 = vsel %vm145_vm15, %v147_v50, %v143_v52 }
 0x19a   :  { %v149_v54 = vmul.f32 %v148_v53, %v123_v51 }
 0x19c   :  { %v150_v55 = vsub.f32 %v116_v28, %v149_v54 }
 0x19e   :  { %v151_v56 = vsub.f32 0.0, %v150_v55  ;;  %v155_v60 = vmul.f32 %v150_v55, %v150_v55 }
 0x1a0   :  { %v152_v57 = vmul.f32 1.442695, %v151_v56 }
 0x1a2   :  { %192 = vpow2.f32 %v152_v57 }
 0x1a8   :  { %v193_v58 = vpop.eup %192 }
 0x1a9   :  { %v154_v59 = vmul.f32 %v193_v58, %v225_v20  ;;  %159 = vst.msk [vmem:[%s248_s3] sm:$0xff] %vm157_vm0, %v193_v58 }
 0x1ab   :  { %v156_v61 = vadd.f32 %v155_v60, %v154_v59 }
 0x1ad   :  { %158 = vst.msk [vmem:[%s249_s2] sm:$0xff] %vm157_vm0, %v156_v61 }

</bundles_post_ra>
